<compile_context>
chip_gen: v5e
topology: v5e:2x2
jax: 0.10.0
libtpu: 0.0.40
codegen_flags: <defaults>
</compile_context>

<pallas_src>
import jax
import jax.numpy as jnp
from jax import lax
from jax.experimental import pallas as pl
from jax.experimental.pallas import tpu as pltpu


def _bottleneck_kernel(x_ref, w1_ref, b1_ref, w2_ref, b2_ref, w4_ref, b4_ref,
                       alpha_ref, o_ref, ypad_ref):
    TN, H, WC = x_ref.shape
    M = TN * H

    def prelu(v, a):
        return jnp.where(v > 0, v, a * v)

    x = x_ref[...].reshape(M, WC)                                   # f32

    # --- Conv2d 1x1 + BatchNorm (folded) + PReLU -------------------------
    y = jnp.dot(x.astype(jnp.bfloat16), w1_ref[...],
                preferred_element_type=jnp.float32) + b1_ref[...]
    y = prelu(y, alpha_ref[0])

    # --- Conv2d (5,1) pad (2,0) + Conv2d (1,5) pad (0,2) + BatchNorm -----
    # All folded (on the host) into a single K = 5*WC matmul.  The 5 H-shifted
    # copies of y are produced with static sublane slices of a zero-padded
    # scratch buffer; wrapped rows (incl. across sample boundaries) are masked.
    zpad = jnp.zeros((2, WC), jnp.float32)
    ypad_ref[pl.ds(0, 2), :] = zpad
    ypad_ref[pl.ds(M + 2, 2), :] = zpad
    ypad_ref[pl.ds(2, M), :] = y

    # per-sample row index (0..H-1) for every output row
    row = lax.broadcasted_iota(jnp.int32, (TN, H, WC), 1).reshape(M, WC)

    parts = []
    for k in range(5):
        d = k - 2                                  # out[h] += w2[k] . y[h + d]
        s = ypad_ref[pl.ds(2 + d, M), :]           # = y[h + d] (zero-padded)
        if d != 0:
            s = jnp.where((row + d >= 0) & (row + d < H), s, 0.0)
        parts.append(s)
    ycat = jnp.concatenate(parts, axis=-1).astype(jnp.bfloat16)     # (M, 5*WC)

    y = jnp.dot(ycat, w2_ref[...],
                preferred_element_type=jnp.float32) + b2_ref[...]
    y = prelu(y, alpha_ref[1])

    # --- Conv2d 1x1 + BatchNorm (folded) + PReLU -------------------------
    y = jnp.dot(y.astype(jnp.bfloat16), w4_ref[...],
                preferred_element_type=jnp.float32) + b4_ref[...]
    y = prelu(y, alpha_ref[2])

    # Dropout2d(p=0) -> identity.  Residual add + final PReLU (self.activate).
    o_ref[...] = prelu(y + x, alpha_ref[3]).reshape(TN, H, WC)


def bottleneck_asymmetric(x_nchw, params, tile_n=None):
    """Forward pass of BottleneckModule_Asymmetric (asymmetric=5, padding=2)."""
    N, C, H, W = x_nchw.shape
    WC = W * C
    eps = 1e-5

    def bn_scale_shift(gamma, beta, mean, var):
        scale = gamma / jnp.sqrt(var + eps)
        return scale, beta - mean * scale

    def tile_vec(v):                 # per-channel (C,) -> (1, W*C), idx = w*C + c
        return jnp.tile(v, W)[None, :]

    s1, t1 = bn_scale_shift(*params['bn1'])
    s2, t2 = bn_scale_shift(*params['bn2'])
    s3, t3 = bn_scale_shift(*params['bn3'])
    s1v, t1v = tile_vec(s1), tile_vec(t1)
    s2v, t2v = tile_vec(s2), tile_vec(t2)
    s3v, t3v = tile_vec(s3), tile_vec(t3)
    b1v, b2v = tile_vec(params['b1']), tile_vec(params['b2'])
    b3v, b4v = tile_vec(params['b3']), tile_vec(params['b4'])

    eyeW = jnp.eye(W, dtype=jnp.float32)
    bd1 = jnp.kron(eyeW, params['w1'])                               # (WC, WC)
    bd4 = jnp.kron(eyeW, params['w4'])                               # (WC, WC)
    m3 = sum(jnp.kron(jnp.eye(W, k=2 - k, dtype=jnp.float32), params['w3'][k])
             for k in range(5))                                      # (WC, WC)

    # Fold BN1 into conv1:  y1 = prelu(x @ w1_eff + bias1)
    w1_eff = (bd1 * s1v).astype(jnp.bfloat16)
    bias1 = b1v * s1v + t1v

    # Fuse conv2 (5,1), conv3 (1,5) and BN2 into one K = 5*WC matmul:
    #   y2 = prelu( concat_k Shift_{k-2}(y1) @ w2_eff + bias23 )
    w2_rows = [jnp.kron(eyeW, params['w2'][k]) @ m3 for k in range(5)]
    w2_eff = (jnp.concatenate(w2_rows, axis=0) * s2v).astype(jnp.bfloat16)  # (5*WC, WC)
    bias23 = (b2v @ m3 + b3v) * s2v + t2v

    # Fold BN3 into conv4.
    w4_eff = (bd4 * s3v).astype(jnp.bfloat16)
    bias4 = b4v * s3v + t3v

    # --- batching: multiple samples per grid step to grow the matmul M dim ---
    if tile_n is None:
        tile_n = max(1, 128 // H)        # aim for ~128 rows per matmul
        tile_n = min(tile_n, N)
        if N > 1:
            tile_n = min(tile_n, -(-N // 2))   # keep >=2 grid steps (v7x 2 TCs)
    n_pad = (-N) % tile_n

    x_k = jnp.transpose(x_nchw, (0, 2, 3, 1)).reshape(N, H, WC).astype(jnp.float32)
    if n_pad:
        x_k = jnp.concatenate(
            [x_k, jnp.zeros((n_pad, H, WC), jnp.float32)], axis=0)
    Np = x_k.shape[0]

    vec = pl.BlockSpec((1, WC), lambda n: (0, 0))
    # NOTE: constant index_maps -> Pallas fetches weight blocks once and keeps
    # them VMEM-resident across grid steps (no per-step re-DMA).
    out = pl.pallas_call(
        _bottleneck_kernel,
        out_shape=jax.ShapeDtypeStruct((Np, H, WC), jnp.float32),
        grid=(Np // tile_n,),
        in_specs=[
            pl.BlockSpec((tile_n, H, WC), lambda n: (n, 0, 0)),      # x
            pl.BlockSpec((WC, WC), lambda n: (0, 0)), vec,           # w1_eff, bias1
            pl.BlockSpec((5 * WC, WC), lambda n: (0, 0)), vec,       # w2_eff, bias23
            pl.BlockSpec((WC, WC), lambda n: (0, 0)), vec,           # w4_eff, bias4
            pl.BlockSpec(memory_space=pltpu.MemorySpace.SMEM),       # PReLU alphas (4,)
        ],
        out_specs=pl.BlockSpec((tile_n, H, WC), lambda n: (n, 0, 0)),
        scratch_shapes=[pltpu.VMEM((tile_n * H + 4, WC), jnp.float32)],
        compiler_params=pltpu.CompilerParams(
            dimension_semantics=("parallel",)),
    )(x_k, w1_eff, bias1, w2_eff, bias23, w4_eff, bias4, params['alphas'])

    out = out[:N]
    return jnp.transpose(out.reshape(N, H, W, C), (0, 3, 1, 2))


def ref_forward(x_nchw, p):
    """Pure-JAX NCHW reference mirroring the PyTorch module semantics (f32)."""
    dn = ('NCHW', 'OIHW', 'NCHW')
    eps = 1e-5

    def bn(y, gamma, beta, mean, var):
        scale = gamma / jnp.sqrt(var + eps)
        shift = beta - mean * scale
        return y * scale[None, :, None, None] + shift[None, :, None, None]

    def prelu(y, a):
        return jnp.where(y > 0, y, a * y)

    w1 = jnp.transpose(p['w1'])[:, :, None, None]              # (Cout,Cin,1,1)
    y = lax.conv_general_dilated(x_nchw, w1, (1, 1), [(0, 0), (0, 0)],
                                 dimension_numbers=dn) + p['b1'][None, :, None, None]
    y = prelu(bn(y, *p['bn1']), p['alphas'][0])

    w2 = jnp.transpose(p['w2'], (2, 1, 0))[:, :, :, None]       # (Cout,Cin,5,1)
    y = lax.conv_general_dilated(y, w2, (1, 1), [(2, 2), (0, 0)],
                                 dimension_numbers=dn) + p['b2'][None, :, None, None]
    w3 = jnp.transpose(p['w3'], (2, 1, 0))[:, :, None, :]       # (Cout,Cin,1,5)
    y = lax.conv_general_dilated(y, w3, (1, 1), [(0, 0), (2, 2)],
                                 dimension_numbers=dn) + p['b3'][None, :, None, None]
    y = prelu(bn(y, *p['bn2']), p['alphas'][1])

    w4 = jnp.transpose(p['w4'])[:, :, None, None]
    y = lax.conv_general_dilated(y, w4, (1, 1), [(0, 0), (0, 0)],
                                 dimension_numbers=dn) + p['b4'][None, :, None, None]
    y = prelu(bn(y, *p['bn3']), p['alphas'][2])

    return prelu(y + x_nchw, p['alphas'][3])


if __name__ == "__main__":
    # in_ch == out_ch == 8 (required for the residual add); W*C = 128 lanes.
    N, C, H, W = 4, 8, 16, 16
    key = jax.random.PRNGKey(0)
    keys = jax.random.split(key, 21)

    def rnd(k, shape, scale=0.2):
        return jax.random.normal(k, shape, dtype=jnp.float32) * scale

    params = {
        'w1': rnd(keys[0], (C, C)),      # (Cin, Cout)
        'b1': rnd(keys[1], (C,)),
        'bn1': (1.0 + rnd(keys[2], (C,), 0.1), rnd(keys[3], (C,), 0.1),
                rnd(keys[4], (C,), 0.1), 1.0 + jnp.abs(rnd(keys[5], (C,), 0.1))),
        'w2': rnd(keys[6], (5, C, C)),   # (kH, Cin, Cout) for the (5,1) conv
        'b2': rnd(keys[7], (C,)),
        'w3': rnd(keys[8], (5, C, C)),   # (kW, Cin, Cout) for the (1,5) conv
        'b3': rnd(keys[9], (C,)),
        'bn2': (1.0 + rnd(keys[10], (C,), 0.1), rnd(keys[11], (C,), 0.1),
                rnd(keys[12], (C,), 0.1), 1.0 + jnp.abs(rnd(keys[13], (C,), 0.1))),
        'w4': rnd(keys[14], (C, C)),
        'b4': rnd(keys[15], (C,)),
        'bn3': (1.0 + rnd(keys[16], (C,), 0.1), rnd(keys[17], (C,), 0.1),
                rnd(keys[18], (C,), 0.1), 1.0 + jnp.abs(rnd(keys[19], (C,), 0.1))),
        'alphas': jnp.full((4,), 0.25, dtype=jnp.float32),   # nn.PReLU() init value
    }

    x = jax.random.normal(keys[20], (N, C, H, W), dtype=jnp.float32)

    out = bottleneck_asymmetric(x, params)
    out = jax.block_until_ready(out)

    ref = ref_forward(x, params)
    assert out.shape == x.shape
    # Tolerance sized for bf16 MXU operands (3 chained bf16 matmuls + folded BN)
    # against the pure-f32 reference.
    if not jnp.allclose(out, ref, atol=3e-2, rtol=3e-2):
        raise AssertionError("Pallas kernel output mismatch vs JAX reference")

    print("KERNEL_OK")
</pallas_src>

<mosaic_0001>
module attributes {stable_mosaic.version = 11 : i64} {
  func.func @_bottleneck_kernel(%arg0: i32, %arg1: memref<2x16x128xf32, #tpu.memory_space<vmem>>, %arg2: memref<128x128xbf16, #tpu.memory_space<vmem>>, %arg3: memref<1x128xf32, #tpu.memory_space<vmem>>, %arg4: memref<640x128xbf16, #tpu.memory_space<vmem>>, %arg5: memref<1x128xf32, #tpu.memory_space<vmem>>, %arg6: memref<128x128xbf16, #tpu.memory_space<vmem>>, %arg7: memref<1x128xf32, #tpu.memory_space<vmem>>, %arg8: memref<4xf32, #tpu.memory_space<smem>>, %arg9: memref<2x16x128xf32, #tpu.memory_space<vmem>>, %arg10: memref<36x128xf32, #tpu.memory_space<vmem>>) attributes {dimension_semantics = [#tpu.dimension_semantics<parallel>], iteration_bounds = array<i64: 2>, scalar_prefetch = 0 : i64, scratch_operands = 1 : i64, tpu.core_type = #tpu.core_type<tc>, window_params = [{transform_indices = @transform_0, window_bounds = array<i64: 2, 16, 128>}, {pipeline_mode = #tpu.pipeline_mode<synchronous>, transform_indices = @transform_1, window_bounds = array<i64: 128, 128>}, {pipeline_mode = #tpu.pipeline_mode<synchronous>, transform_indices = @transform_2, window_bounds = array<i64: 1, 128>}, {pipeline_mode = #tpu.pipeline_mode<synchronous>, transform_indices = @transform_3, window_bounds = array<i64: 640, 128>}, {pipeline_mode = #tpu.pipeline_mode<synchronous>, transform_indices = @transform_4, window_bounds = array<i64: 1, 128>}, {pipeline_mode = #tpu.pipeline_mode<synchronous>, transform_indices = @transform_5, window_bounds = array<i64: 128, 128>}, {pipeline_mode = #tpu.pipeline_mode<synchronous>, transform_indices = @transform_6, window_bounds = array<i64: 1, 128>}, {transform_indices = @transform_7, window_bounds = array<i64: 4>}, {transform_indices = @transform_8, window_bounds = array<i64: 2, 16, 128>}]} {
    %c0 = arith.constant 0 : index
    %c0_0 = arith.constant 0 : index
    %c0_1 = arith.constant 0 : index
    %0 = vector.load %arg1[%c0, %c0_0, %c0_1] : memref<2x16x128xf32, #tpu.memory_space<vmem>>, vector<2x16x128xf32>
    %1 = vector.shape_cast %0 : vector<2x16x128xf32> to vector<32x128xf32>
    %2 = arith.truncf %1 : vector<32x128xf32> to vector<32x128xbf16>
    %c0_2 = arith.constant 0 : index
    %c0_3 = arith.constant 0 : index
    %3 = vector.load %arg2[%c0_2, %c0_3] : memref<128x128xbf16, #tpu.memory_space<vmem>>, vector<128x128xbf16>
    %cst = arith.constant dense<0.000000e+00> : vector<32x128xf32>
    %4 = tpu.matmul %2, %3, %cst {dimension_numbers = #tpu.dot_dimension_numbers<[1], [0], [0], [1], [0, 0, 1, 1], [], []>} : vector<32x128xbf16>, vector<128x128xbf16>, vector<32x128xf32> -> vector<32x128xf32>
    %c0_4 = arith.constant 0 : index
    %c0_5 = arith.constant 0 : index
    %5 = vector.load %arg3[%c0_4, %c0_5] : memref<1x128xf32, #tpu.memory_space<vmem>>, vector<1x128xf32>
    %6 = vector.broadcast %5 : vector<1x128xf32> to vector<32x128xf32>
    %7 = arith.addf %4, %6 : vector<32x128xf32>
    %c0_6 = arith.constant 0 : index
    %8 = memref.load %arg8[%c0_6] : memref<4xf32, #tpu.memory_space<smem>>
    %cst_7 = arith.constant 0.000000e+00 : f32
    %9 = vector.broadcast %cst_7 : f32 to vector<32x128xf32>
    %10 = arith.cmpf ogt, %7, %9 : vector<32x128xf32>
    %11 = vector.broadcast %8 : f32 to vector<32x128xf32>
    %12 = arith.mulf %11, %7 : vector<32x128xf32>
    %13 = arith.select %10, %7, %12 : vector<32x128xi1>, vector<32x128xf32>
    %cst_8 = arith.constant 0.000000e+00 : f32
    %14 = vector.broadcast %cst_8 : f32 to vector<2x128xf32>
    %c0_9 = arith.constant 0 : index
    %c0_10 = arith.constant 0 : index
    %15 = vector.load %arg10[%c0_9, %c0_10] : memref<36x128xf32, #tpu.memory_space<vmem>>, vector<2x128xf32>
    tpu.vector_store %arg10[%c0_9, %c0_10], %14 {strides = array<i32>} : memref<36x128xf32, #tpu.memory_space<vmem>>, vector<2x128xf32>,
    %c34 = arith.constant 34 : index
    %c0_11 = arith.constant 0 : index
    %16 = vector.load %arg10[%c34, %c0_11] : memref<36x128xf32, #tpu.memory_space<vmem>>, vector<2x128xf32>
    tpu.vector_store %arg10[%c34, %c0_11], %14 {strides = array<i32>} : memref<36x128xf32, #tpu.memory_space<vmem>>, vector<2x128xf32>,
    %c2 = arith.constant 2 : index
    %c0_12 = arith.constant 0 : index
    %17 = vector.load %arg10[%c2, %c0_12] : memref<36x128xf32, #tpu.memory_space<vmem>>, vector<32x128xf32>
    tpu.vector_store %arg10[%c2, %c0_12], %13 {strides = array<i32>} : memref<36x128xf32, #tpu.memory_space<vmem>>, vector<32x128xf32>,
    %18 = tpu.iota {dimensions = array<i32: 1>} : vector<2x16x128xi32>
    %19 = vector.shape_cast %18 : vector<2x16x128xi32> to vector<32x128xi32>
    %c0_13 = arith.constant 0 : index
    %c0_14 = arith.constant 0 : index
    %20 = vector.load %arg10[%c0_13, %c0_14] : memref<36x128xf32, #tpu.memory_space<vmem>>, vector<32x128xf32>
    %c-2_i32 = arith.constant -2 : i32
    %21 = vector.broadcast %c-2_i32 : i32 to vector<32x128xi32>
    %22 = arith.addi %19, %21 : vector<32x128xi32>
    %c0_i32 = arith.constant 0 : i32
    %23 = vector.broadcast %c0_i32 : i32 to vector<32x128xi32>
    %24 = arith.cmpi sge, %22, %23 : vector<32x128xi32>
    %c-2_i32_15 = arith.constant -2 : i32
    %25 = vector.broadcast %c-2_i32_15 : i32 to vector<32x128xi32>
    %26 = arith.addi %19, %25 : vector<32x128xi32>
    %c16_i32 = arith.constant 16 : i32
    %27 = vector.broadcast %c16_i32 : i32 to vector<32x128xi32>
    %28 = arith.cmpi slt, %26, %27 : vector<32x128xi32>
    %29 = arith.andi %24, %28 : vector<32x128xi1>
    %cst_16 = arith.constant 0.000000e+00 : f32
    %30 = vector.broadcast %cst_16 : f32 to vector<32x128xf32>
    %31 = arith.select %29, %20, %30 : vector<32x128xi1>, vector<32x128xf32>
    %c1 = arith.constant 1 : index
    %c0_17 = arith.constant 0 : index
    %32 = vector.load %arg10[%c1, %c0_17] : memref<36x128xf32, #tpu.memory_space<vmem>>, vector<32x128xf32>
    %c-1_i32 = arith.constant -1 : i32
    %33 = vector.broadcast %c-1_i32 : i32 to vector<32x128xi32>
    %34 = arith.addi %19, %33 : vector<32x128xi32>
    %c0_i32_18 = arith.constant 0 : i32
    %35 = vector.broadcast %c0_i32_18 : i32 to vector<32x128xi32>
    %36 = arith.cmpi sge, %34, %35 : vector<32x128xi32>
    %c-1_i32_19 = arith.constant -1 : i32
    %37 = vector.broadcast %c-1_i32_19 : i32 to vector<32x128xi32>
    %38 = arith.addi %19, %37 : vector<32x128xi32>
    %c16_i32_20 = arith.constant 16 : i32
    %39 = vector.broadcast %c16_i32_20 : i32 to vector<32x128xi32>
    %40 = arith.cmpi slt, %38, %39 : vector<32x128xi32>
    %41 = arith.andi %36, %40 : vector<32x128xi1>
    %cst_21 = arith.constant 0.000000e+00 : f32
    %42 = vector.broadcast %cst_21 : f32 to vector<32x128xf32>
    %43 = arith.select %41, %32, %42 : vector<32x128xi1>, vector<32x128xf32>
    %c2_22 = arith.constant 2 : index
    %c0_23 = arith.constant 0 : index
    %44 = vector.load %arg10[%c2_22, %c0_23] : memref<36x128xf32, #tpu.memory_space<vmem>>, vector<32x128xf32>
    %c3 = arith.constant 3 : index
    %c0_24 = arith.constant 0 : index
    %45 = vector.load %arg10[%c3, %c0_24] : memref<36x128xf32, #tpu.memory_space<vmem>>, vector<32x128xf32>
    %c1_i32 = arith.constant 1 : i32
    %46 = vector.broadcast %c1_i32 : i32 to vector<32x128xi32>
    %47 = arith.addi %19, %46 : vector<32x128xi32>
    %c0_i32_25 = arith.constant 0 : i32
    %48 = vector.broadcast %c0_i32_25 : i32 to vector<32x128xi32>
    %49 = arith.cmpi sge, %47, %48 : vector<32x128xi32>
    %c1_i32_26 = arith.constant 1 : i32
    %50 = vector.broadcast %c1_i32_26 : i32 to vector<32x128xi32>
    %51 = arith.addi %19, %50 : vector<32x128xi32>
    %c16_i32_27 = arith.constant 16 : i32
    %52 = vector.broadcast %c16_i32_27 : i32 to vector<32x128xi32>
    %53 = arith.cmpi slt, %51, %52 : vector<32x128xi32>
    %54 = arith.andi %49, %53 : vector<32x128xi1>
    %cst_28 = arith.constant 0.000000e+00 : f32
    %55 = vector.broadcast %cst_28 : f32 to vector<32x128xf32>
    %56 = arith.select %54, %45, %55 : vector<32x128xi1>, vector<32x128xf32>
    %c4 = arith.constant 4 : index
    %c0_29 = arith.constant 0 : index
    %57 = vector.load %arg10[%c4, %c0_29] : memref<36x128xf32, #tpu.memory_space<vmem>>, vector<32x128xf32>
    %c2_i32 = arith.constant 2 : i32
    %58 = vector.broadcast %c2_i32 : i32 to vector<32x128xi32>
    %59 = arith.addi %19, %58 : vector<32x128xi32>
    %c0_i32_30 = arith.constant 0 : i32
    %60 = vector.broadcast %c0_i32_30 : i32 to vector<32x128xi32>
    %61 = arith.cmpi sge, %59, %60 : vector<32x128xi32>
    %c2_i32_31 = arith.constant 2 : i32
    %62 = vector.broadcast %c2_i32_31 : i32 to vector<32x128xi32>
    %63 = arith.addi %19, %62 : vector<32x128xi32>
    %c16_i32_32 = arith.constant 16 : i32
    %64 = vector.broadcast %c16_i32_32 : i32 to vector<32x128xi32>
    %65 = arith.cmpi slt, %63, %64 : vector<32x128xi32>
    %66 = arith.andi %61, %65 : vector<32x128xi1>
    %cst_33 = arith.constant 0.000000e+00 : f32
    %67 = vector.broadcast %cst_33 : f32 to vector<32x128xf32>
    %68 = arith.select %66, %57, %67 : vector<32x128xi1>, vector<32x128xf32>
    %69 = tpu.concatenate %31, %43, %44, %56, %68 in 1 : vector<32x128xf32>, vector<32x128xf32>, vector<32x128xf32>, vector<32x128xf32>, vector<32x128xf32> -> vector<32x640xf32>
    %70 = arith.truncf %69 : vector<32x640xf32> to vector<32x640xbf16>
    %c0_34 = arith.constant 0 : index
    %c0_35 = arith.constant 0 : index
    %71 = vector.load %arg4[%c0_34, %c0_35] : memref<640x128xbf16, #tpu.memory_space<vmem>>, vector<640x128xbf16>
    %cst_36 = arith.constant dense<0.000000e+00> : vector<32x128xf32>
    %72 = tpu.matmul %70, %71, %cst_36 {dimension_numbers = #tpu.dot_dimension_numbers<[1], [0], [0], [1], [0, 0, 1, 1], [], []>} : vector<32x640xbf16>, vector<640x128xbf16>, vector<32x128xf32> -> vector<32x128xf32>
    %c0_37 = arith.constant 0 : index
    %c0_38 = arith.constant 0 : index
    %73 = vector.load %arg5[%c0_37, %c0_38] : memref<1x128xf32, #tpu.memory_space<vmem>>, vector<1x128xf32>
    %74 = vector.broadcast %73 : vector<1x128xf32> to vector<32x128xf32>
    %75 = arith.addf %72, %74 : vector<32x128xf32>
    %c1_39 = arith.constant 1 : index
    %76 = memref.load %arg8[%c1_39] : memref<4xf32, #tpu.memory_space<smem>>
    %cst_40 = arith.constant 0.000000e+00 : f32
    %77 = vector.broadcast %cst_40 : f32 to vector<32x128xf32>
    %78 = arith.cmpf ogt, %75, %77 : vector<32x128xf32>
    %79 = vector.broadcast %76 : f32 to vector<32x128xf32>
    %80 = arith.mulf %79, %75 : vector<32x128xf32>
    %81 = arith.select %78, %75, %80 : vector<32x128xi1>, vector<32x128xf32>
    %82 = arith.truncf %81 : vector<32x128xf32> to vector<32x128xbf16>
    %c0_41 = arith.constant 0 : index
    %c0_42 = arith.constant 0 : index
    %83 = vector.load %arg6[%c0_41, %c0_42] : memref<128x128xbf16, #tpu.memory_space<vmem>>, vector<128x128xbf16>
    %cst_43 = arith.constant dense<0.000000e+00> : vector<32x128xf32>
    %84 = tpu.matmul %82, %83, %cst_43 {dimension_numbers = #tpu.dot_dimension_numbers<[1], [0], [0], [1], [0, 0, 1, 1], [], []>} : vector<32x128xbf16>, vector<128x128xbf16>, vector<32x128xf32> -> vector<32x128xf32>
    %c0_44 = arith.constant 0 : index
    %c0_45 = arith.constant 0 : index
    %85 = vector.load %arg7[%c0_44, %c0_45] : memref<1x128xf32, #tpu.memory_space<vmem>>, vector<1x128xf32>
    %86 = vector.broadcast %85 : vector<1x128xf32> to vector<32x128xf32>
    %87 = arith.addf %84, %86 : vector<32x128xf32>
    %c2_46 = arith.constant 2 : index
    %88 = memref.load %arg8[%c2_46] : memref<4xf32, #tpu.memory_space<smem>>
    %cst_47 = arith.constant 0.000000e+00 : f32
    %89 = vector.broadcast %cst_47 : f32 to vector<32x128xf32>
    %90 = arith.cmpf ogt, %87, %89 : vector<32x128xf32>
    %91 = vector.broadcast %88 : f32 to vector<32x128xf32>
    %92 = arith.mulf %91, %87 : vector<32x128xf32>
    %93 = arith.select %90, %87, %92 : vector<32x128xi1>, vector<32x128xf32>
    %94 = arith.addf %93, %1 : vector<32x128xf32>
    %c3_48 = arith.constant 3 : index
    %95 = memref.load %arg8[%c3_48] : memref<4xf32, #tpu.memory_space<smem>>
    %cst_49 = arith.constant 0.000000e+00 : f32
    %96 = vector.broadcast %cst_49 : f32 to vector<32x128xf32>
    %97 = arith.cmpf ogt, %94, %96 : vector<32x128xf32>
    %98 = vector.broadcast %95 : f32 to vector<32x128xf32>
    %99 = arith.mulf %98, %94 : vector<32x128xf32>
    %100 = arith.select %97, %94, %99 : vector<32x128xi1>, vector<32x128xf32>
    %101 = vector.shape_cast %100 : vector<32x128xf32> to vector<2x16x128xf32>
    %c0_50 = arith.constant 0 : index
    %c0_51 = arith.constant 0 : index
    %c0_52 = arith.constant 0 : index
    %102 = vector.load %arg9[%c0_50, %c0_51, %c0_52] : memref<2x16x128xf32, #tpu.memory_space<vmem>>, vector<2x16x128xf32>
    tpu.vector_store %arg9[%c0_50, %c0_51, %c0_52], %101 {strides = array<i32>} : memref<2x16x128xf32, #tpu.memory_space<vmem>>, vector<2x16x128xf32>,
    return
  }
  func.func @transform_0(%arg0: i32) -> (i32, i32, i32) {
    %c0_i32 = arith.constant 0 : i32
    %c0_i32_0 = arith.constant 0 : i32
    %c0_i32_1 = arith.constant 0 : i32
    return %arg0, %c0_i32, %c0_i32_0 : i32, i32, i32
  }
  func.func @transform_1(%arg0: i32) -> (i32, i32) {
    %c0_i32 = arith.constant 0 : i32
    %c0_i32_0 = arith.constant 0 : i32
    %c0_i32_1 = arith.constant 0 : i32
    return %c0_i32, %c0_i32_0 : i32, i32
  }
  func.func @transform_2(%arg0: i32) -> (i32, i32) {
    %c0_i32 = arith.constant 0 : i32
    %c0_i32_0 = arith.constant 0 : i32
    %c0_i32_1 = arith.constant 0 : i32
    return %c0_i32, %c0_i32_0 : i32, i32
  }
  func.func @transform_3(%arg0: i32) -> (i32, i32) {
    %c0_i32 = arith.constant 0 : i32
    %c0_i32_0 = arith.constant 0 : i32
    %c0_i32_1 = arith.constant 0 : i32
    return %c0_i32, %c0_i32_0 : i32, i32
  }
  func.func @transform_4(%arg0: i32) -> (i32, i32) {
    %c0_i32 = arith.constant 0 : i32
    %c0_i32_0 = arith.constant 0 : i32
    %c0_i32_1 = arith.constant 0 : i32
    return %c0_i32, %c0_i32_0 : i32, i32
  }
  func.func @transform_5(%arg0: i32) -> (i32, i32) {
    %c0_i32 = arith.constant 0 : i32
    %c0_i32_0 = arith.constant 0 : i32
    %c0_i32_1 = arith.constant 0 : i32
    return %c0_i32, %c0_i32_0 : i32, i32
  }
  func.func @transform_6(%arg0: i32) -> (i32, i32) {
    %c0_i32 = arith.constant 0 : i32
    %c0_i32_0 = arith.constant 0 : i32
    %c0_i32_1 = arith.constant 0 : i32
    return %c0_i32, %c0_i32_0 : i32, i32
  }
  func.func @transform_7(%arg0: i32) -> i32 {
    %c0_i32 = arith.constant 0 : i32
    %c0_i32_0 = arith.constant 0 : i32
    return %c0_i32 : i32
  }
  func.func @transform_8(%arg0: i32) -> (i32, i32, i32) {
    %c0_i32 = arith.constant 0 : i32
    %c0_i32_0 = arith.constant 0 : i32
    %c0_i32_1 = arith.constant 0 : i32
    return %arg0, %c0_i32, %c0_i32_0 : i32, i32, i32
  }
}

</mosaic_0001>

<bundles_post_ra>
// kernel: tpu_custom_call.1
= control target key start
LH: loop header
LB: loop body
LE: loop exit
PB: predicated region body
PF: predicated region fallthrough
CT: control target
= control target key end

     0   :  { %s2226_s0 = inlined_call_operand.hbm [shape: f32[4,16,128], index: 0, kind: input, shape index: {}]   ;;  %s2227_s1 = inlined_call_operand.hbm [shape: bf16[128,128], index: 1, kind: input, shape index: {}]   ;;  %s2228_s2 = inlined_call_operand.vmem [shape: f32[1,128], index: 2, kind: input, shape index: {}]   ;;  %s2229_s3 = inlined_call_operand.hbm [shape: bf16[640,128], index: 3, kind: input, shape index: {}]   ;;  %s2230_s4 = inlined_call_operand.vmem [shape: f32[1,128], index: 4, kind: input, shape index: {}]   ;;  %s2231_s5 = inlined_call_operand.hbm [shape: bf16[128,128], index: 5, kind: input, shape index: {}]   ;;  %s2232_s6 = inlined_call_operand.vmem [shape: f32[1,128], index: 6, kind: input, shape index: {}]   ;;  %s2233_s7 = inlined_call_operand.vmem [shape: f32[4], index: 7, kind: input, shape index: {}]   ;;  %s2234_s8 = inlined_call_operand.hbm [shape: f32[4,16,128], index: 8, kind: output, shape index: {}]  }
   0x1   :  { %2235 = sst [smem:[#allocation19_spill]] %s2227_s1 }
   0x2   :  { %2236 = sst [smem:[#allocation20_spill]] %s2229_s3 }
   0x3   :  { %13 = vsyncpa [#allocation4], 0 }
   0x4   :  { %15 = vsyncpa [#allocation4 + $0x1], 0 }
   0x5   :  { %16 = vsyncpa [#allocation8], 0 }
   0x6   :  { %17 = vsyncpa [#allocation11], 0 }
   0x7   :  { %18 = vsyncpa [#allocation6], 0 }
   0x8   :  { %19 = vsyncpa [#allocation5], 0 }
   0x9   :  { %21 = vsyncpa [#allocation5 + $0x1], 0  ;;  %s1989_s27 = smov 0   ;;  %s1991_s28 = smov 0  }
   0xa   :  { %s1993_s29 = smov 0   ;;  %s1995_s30 = smov 0  }
   0xb LB: > { %s2010_s9 = sadd.s32 4294967295, %s1930_s30   ;;  %s1276_s10 = sadd.s32 4294967294, %s1930_s30   ;;  %s1930_s30 = sphi %s1995_s30, %s2255_s30   ;;  %s1926_s29 = sphi %s1993_s29, %s2254_s29   ;;  %s1922_s28 = sphi %s1991_s28, %s2253_s28   ;;  %s1918_s27 = sphi %s1989_s27, %s2252_s27  }
   0xc   : > { %p47_p0 = scmp.ne.s32.totalorder %s1922_s28, %s1918_s27  ;;  %p48_p1 = scmp.eq.s32.totalorder %s2010_s9, 0 }
   0xd   : > { %p218_p2 = scmp.eq.s32.totalorder %s2010_s9, 1  ;;  %p224_p3 = scmp.eq.s32.totalorder %s1276_s10, 1 }
   0xe   : > { %p2019_p4 = por %p48_p1, %p47_p0  ;;  %p1277_p5 = scmp.ge.s32.totalorder %s1930_s30, 1 }
   0xf   : > { %p2024_p6 = por %p224_p3, %p47_p0  ;;  %p231_p7 = scmp.lt.s32.totalorder %s1930_s30, 3 }
  0x10   : > { %s2239_s1 = sld [smem:[#allocation19_spill]]  ;;  %s1932_s17 = smov [#allocation7]  }
  0x11   : > { %p2032_p8 = pnand %p1277_p5, %p231_p7  ;;  %s244_s18 = sshll.u32 %s1932_s17, 4  ;;  %s245_s18 = int_to_ptr.vmem [resolvable:$true] %s244_s18 }
  0x12   : > { %s2242_s3 = sld [smem:[#allocation20_spill]]  ;;  %s1933_s23 = smov 64  }
  0x13   : > { %p1639_p9 = pneg %p2032_p8  ;;  %s1934_s24 = smov 4  }
  0x14   : > { %s1935_s25 = smov [#allocation9]   ;;  %s276_s14 = sshll.u32 %s2231_s5, 4  ;;  %s277_s14 = int_to_ptr.hbm [resolvable:$true] %s276_s14 }
  0x15   : > { %p2040_p10 = pnand %p1639_p9, %p48_p1  ;;  %s261_s26 = sshll.u32 %s1935_s25, 4  ;;  %s262_s26 = int_to_ptr.vmem [resolvable:$true] %s261_s26 }
  0x16   : > { %s242_s15 = sshll.u32 %s2239_s1, 4  ;;  %s1937_s25 = smov [#allocation12]   ;;  %s243_s15 = int_to_ptr.hbm [resolvable:$true] %s242_s15 }
  0x17   : > { %1642 = dma.hbm_to_vmem [thread:$0]  (!%p2040_p10), %s243_s15, 1024, %s245_s18, [#allocation8], %s1933_s23, %s1933_s23, %s1934_s24  }
  0x18   : > { %s259_s22 = sshll.u32 %s2242_s3, 4  ;;  %s294_s15 = sshll.u32 %s2233_s7, 4  ;;  %s260_s22 = int_to_ptr.hbm [resolvable:$true] %s259_s22  ;;  %s295_s15 = int_to_ptr.vmem [resolvable:$true] %s294_s15 }
  0x19   : > { %1645 = dma.hbm_to_vmem [thread:$0]  (!%p2040_p10), %s260_s22, 5120, %s262_s26, [#allocation8], %s1933_s23, %s1933_s23, %s1934_s24  }
  0x1a   : > { %s1936_s18 = smov [#allocation10]   ;;  %s2063_s10 = sadd.s32 1, %s1930_s30  }
  0x1b   : > { %s278_s21 = sshll.u32 %s1936_s18, 4  ;;  %s31_s22 = ssub.s32 %s1930_s30, %s2063_s10  ;;  %s279_s21 = int_to_ptr.vmem [resolvable:$true] %s278_s21 }
  0x1c   : > { %1648 = dma.hbm_to_vmem [thread:$0]  (!%p2040_p10), %s277_s14, 1024, %s279_s21, [#allocation11], %s1933_s23, %s1933_s23, %s1934_s24  }
  0x1d   : > { %1651 = dma.vmem_to_smem (!%p2040_p10), %s295_s15, 16, %s1937_s25, [#allocation6]  }
  0x1e   : > { %p32_p12 = scmp.eq.s32.totalorder %s31_s22, 0  ;;  %s34_s26 = sadd.s32 1, %s1926_s29 }
  0x1f   : > { %p41_p13 = scmp.ne.s32.totalorder %s1926_s29, %s1922_s28  ;;  %p42_p0 = scmp.eq.s32.totalorder %s1930_s30, 0 }
  0x20   : > { %s2072_s13 = scalar_select %p32_p12, %s1926_s29, %s34_s26  }
  0x21   : > { %p43_p3 = por %p42_p0, %p41_p13  ;;  %p2076_p5 = por %p218_p2, %p41_p13 }
  0x22   : > { %p1664_p7 = scmp.lt.s32.totalorder %s1930_s30, 2  ;;  %s305_s23 = sand.u32 1, %s1926_s29  }
  0x23   : > { %s1283_s19 = sshll.u32 %s305_s23, 5  ;;  %s1552_s24 = sshll.u32 %s1930_s30, 5 }
  0x24   : > { %s315_s15 = scalar_lea.hbm %s2226_s0, %s1552_s24  ;;  %s309_s18 = scalar_lea.vmem [#allocation3], %s1283_s19 }
  0x25   : > { %s318_s21 = sshll.u32 %s309_s18, 4  ;;  %s316_s25 = sshll.u32 %s315_s15, 4  ;;  %s319_s21 = int_to_ptr.vmem [resolvable:$true] %s318_s21  ;;  %s317_s25 = int_to_ptr.hbm [resolvable:$true] %s316_s25 }
  0x26   : > { %p2086_p9 = pnand %p1664_p7, %p43_p3  ;;  %s306_s26 = scalar_lea.sflag [#allocation4], %s305_s23 }
  0x27   : > { %s1822_s1 = sshra.s32 %s317_s25, 4  ;;  %s1829_s14 = scalar_lea.hbm %s2226_s0, 64  ;;  %s1823_s1 = int_to_ptr.hbm [resolvable:$true] %s1822_s1 }
  0x28   : > { %s1824_s3 = scalar_lea.hbm %s1823_s1, 32  ;;  %p1826_p10 = pneg %p2086_p9 }
  0x29   : > { %p1825_p2 = scmp.ne.s32.totalorder %s1823_s1, %s1824_s3  ;;  %p1830_p0 = scmp.lt.s32.totalorder %s1823_s1, %s2226_s0 }
  0x2a   : > { %p1831_p3 = scmp.lt.s32.totalorder %s1829_s14, %s1824_s3 }
  0x2b   : > { %p1827_p12 = pnand %p1826_p10, %p1825_p2 }
  0x2c   : > { %p1832_p7 = por %p1831_p3, %p1830_p0 }
  0x2d   : > { %p1828_p13 = pneg %p1827_p12 }
  0x2f   : > { %p1833_p11 = pnand %p1832_p7, %p1828_p13 }
  0x31   : > { %1836 = shalt.err (!%p1833_p11)
}
  0x32   : > { %s1938_s23 = smov 128   ;;  %s1939_s18 = smov 8  }
  0x33   : > { %1655 = dma.hbm_to_vmem [thread:$0]  (!%p2086_p9), %s317_s25, 512, %s319_s21, %s306_s26, %s1938_s23, %s1938_s23, %s1939_s18  }
  0x34   : > { %330 = sbr.rel (%p2032_p8) target bundleno = 590 (0x24e), region = 52  ;;  %s2103_s24 = sand.u32 (!%p2032_p8), 1, %s1922_s28  }
  0x35   : > { %s1288_s1 = sshll.u32 (!%p2032_p8), %s2103_s24, 5  ;;  %s333_s3 = scalar_lea.sflag (!%p2032_p8), [#allocation4], %s2103_s24 }
  0x36   : > { %s2109_s19 = scalar_lea.vmem (!%p2032_p8), [#allocation3], %s1288_s1 }
  0x39   : > { %1897 = dma.done.wait (%p2019_p4), %s333_s3, 512  }
  0x3a   : > { %1899 = vsyncadd (%p2019_p4), %s333_s3, 4294966784 }
  0x3b   : > { %1901 = dma.done.wait (%p48_p1), [#allocation8], 6144  }
  0x3c   : > { %1903 = vsyncadd (%p48_p1), [#allocation8], 4294961152 }
  0x3d   : > { %1905 = dma.done.wait (%p48_p1), [#allocation11], 1024  }
  0x3e   : > { %1907 = vsyncadd (%p48_p1), [#allocation11], 4294966272 }
  0x3f   : > { %1909 = dma.done.wait (%p48_p1), [#allocation6], 16  }
  0x40   : > { %1911 = vsyncadd (%p48_p1), [#allocation6], 4294967280 }
  0x41   : > { %362 = sfence }
  0x42   : > { %v1560_v0 = vld [vmem:[#allocation7 + $0x38] sm:$0xff]  ;;  %v1559_v1 = vld [vmem:[#allocation7 + $0x30] sm:$0xff]  ;;  %v1558_v2 = vld [vmem:[#allocation7 + $0x28] sm:$0xff]  ;;  %v1940_v30 = vmov 0.0   ;;  %s486_s11 = sld [smem:[#allocation12]]  ;;  %v506_v56 = vlaneseq  ;;  %vm1941_vm5 = vmmov 1  }
  0x43   : > { %467 = vmatpush.bf16.msra.mxu0 %v1560_v0  ;;  %v1557_v3 = vld [vmem:[#allocation7 + $0x20] sm:$0xff]  ;;  %v1556_v4 = vld [vmem:[#allocation7 + $0x18] sm:$0xff]  ;;  %v1555_v8 = vld [vmem:[#allocation7 + $0x10] sm:$0xff]  ;;  %500 = vst [vmem:[#allocation2] sm:$0x3] %v1940_v30  ;;  %s1510_s26 = sld [smem:[#allocation12 + $0x1]] }
  0x44   : > { %v1568_v5 = vld [vmem:[#allocation9 + $0x38] sm:$0xff]  ;;  %v1567_v9 = vld [vmem:[#allocation9 + $0x30] sm:$0xff]  ;;  %v1554_v12 = vld [vmem:[#allocation7 + $0x8] sm:$0xff]  ;;  %501 = vst [vmem:[#allocation2 + $0x22] sm:$0x3] %v1940_v30  ;;  %v507_v60 = vshrl.u32 %v506_v56, 7 }
  0x45   : > { %v1576_v6 = vld [vmem:[#allocation9 + $0x78] sm:$0xff]  ;;  %911 = vmatpush.bf16.msra.mxu1 %v1568_v5  ;;  %v1575_v10 = vld [vmem:[#allocation9 + $0x70] sm:$0xff]  ;;  %v1553_v13 = vld [vmem:[#allocation7] sm:$0xff]  ;;  %s1543_s14 = sld [smem:[#allocation12 + $0x2]]  ;;  %s2183_s18 = scalar_lea.vmem [#allocation13], %s1288_s1 }
  0x46   : > { %v1584_v7 = vld [vmem:[#allocation9 + $0xb8] sm:$0xff]  ;;  %930 = vmatpush.bf16.msra.mxu2 %v1576_v6  ;;  %v1583_v11 = vld [vmem:[#allocation9 + $0xb0] sm:$0xff]  ;;  %v2128_v14 = vld [vmem:[%s2109_s19] sm:$0xff]  ;;  %v513_v0 = vadd.s32 4294967294, %v507_v60  ;;  %s1544_s23 = sld [smem:[#allocation12 + $0x3]]  ;;  %s1610_s1 = sshll.u32 %s2010_s9, 5 }
  0x47   : > { %468 = vmatpush.bf16.msra.mxu0 %v1559_v1  ;;  %949 = vmatpush.bf16.msra.mxu3 %v1584_v7  ;;  %v2131_v15 = vld [vmem:[%s2109_s19 + $0x8] sm:$0xff]  ;;  %v2136_v17 = vld [vmem:[%s2109_s19 + $0x10] sm:$0xff]  ;;  %v2139_v18 = vld [vmem:[%s2109_s19 + $0x18] sm:$0xff]  ;;  %s1159_s16 = sshll.u32 %s2183_s18, 4  ;;  %s1146_s9 = scalar_lea.sflag [#allocation5], %s2103_s24  ;;  %s1160_s16 = int_to_ptr.vmem [resolvable:$true] %s1159_s16 }
  0x48   : > { %v397_v16 = vpack.c.bf16 %v2131_v15, %v2128_v14  ;;  %v398_v19 = vpack.c.bf16 %v2139_v18, %v2136_v17  ;;  %v1582_v20 = vld [vmem:[#allocation9 + $0xa8] sm:$0xff]  ;;  %v1581_v21 = vld [vmem:[#allocation9 + $0xa0] sm:$0xff]  ;;  %v1592_v24 = vld [vmem:[#allocation9 + $0xf8] sm:$0xff]  ;;  %v491_v52 = vstv %s486_s11  ;;  %vm515_vm2 = vcmp.ge.s32.totalorder %v513_v0, 0  ;;  %s1158_s11 = scalar_lea.hbm %s2234_s8, %s1610_s1  ;;  %s1872_s20 = scalar_lea.hbm %s2234_s8, 64 }
  0x49   : > { %912 = vmatpush.bf16.msra.mxu1 %v1567_v9  ;;  %v1566_v22 = vld [vmem:[#allocation9 + $0x28] sm:$0xff]  ;;  %v1580_v25 = vld [vmem:[#allocation9 + $0x98] sm:$0xff]  ;;  %v1565_v26 = vld [vmem:[#allocation9 + $0x20] sm:$0xff]  ;;  %s1161_s21 = sshll.u32 %s1158_s11, 4  ;;  %s1162_s21 = int_to_ptr.hbm [resolvable:$true] %s1161_s21 }
  0x4a   : > { %931 = vmatpush.bf16.msra.mxu2 %v1575_v10  ;;  %v1574_v23 = vld [vmem:[#allocation9 + $0x68] sm:$0xff]  ;;  %v1573_v27 = vld [vmem:[#allocation9 + $0x60] sm:$0xff]  ;;  %v1591_v28 = vld [vmem:[#allocation9 + $0xf0] sm:$0xff]  ;;  %s1866_s25 = sshra.s32 %s1162_s21, 4  ;;  %s1867_s25 = int_to_ptr.hbm [resolvable:$true] %s1866_s25 }
  0x4b   : > { %469 = vmatpush.bf16.msra.mxu0 %v1558_v2  ;;  %950 = vmatpush.bf16.msra.mxu3 %v1583_v11  ;;  %v1579_v29 = vld [vmem:[#allocation9 + $0x90] sm:$0xff]  ;;  %v1564_v31 = vld [vmem:[#allocation9 + $0x18] sm:$0xff]  ;;  %v1590_v33 = vld [vmem:[#allocation9 + $0xe8] sm:$0xff]  ;;  %v529_v2 = vadd.s32 4294967295, %v507_v60  ;;  %s1868_s22 = scalar_lea.hbm %s1867_s25, 32  ;;  %p1873_p11 = scmp.lt.s32.totalorder %s1867_s25, %s2234_s8 }
  0x4c   : > { %v1572_v32 = vld [vmem:[#allocation9 + $0x58] sm:$0xff]  ;;  %v1578_v34 = vld [vmem:[#allocation9 + $0x88] sm:$0xff]  ;;  %v1563_v35 = vld [vmem:[#allocation9 + $0x10] sm:$0xff]  ;;  %p1869_p1 = scmp.ne.s32.totalorder %s1867_s25, %s1868_s22  ;;  %p1874_p9 = scmp.lt.s32.totalorder %s1872_s20, %s1868_s22 }
  0x4d   : > { %913 = vmatpush.bf16.msra.mxu1 %v1566_v22  ;;  %v1571_v36 = vld [vmem:[#allocation9 + $0x50] sm:$0xff]  ;;  %v1589_v37 = vld [vmem:[#allocation9 + $0xe0] sm:$0xff]  ;;  %v1562_v39 = vld [vmem:[#allocation9 + $0x8] sm:$0xff]  ;;  %vm531_vm3 = vcmp.ge.s32.totalorder %v529_v2, 0 }
  0x4e   : > { %932 = vmatpush.bf16.msra.mxu2 %v1574_v23  ;;  %v1577_v38 = vld [vmem:[#allocation9 + $0x80] sm:$0xff]  ;;  %v1570_v40 = vld [vmem:[#allocation9 + $0x48] sm:$0xff]  ;;  %v1588_v41 = vld [vmem:[#allocation9 + $0xd8] sm:$0xff]  ;;  %p1870_p4 = pnand %p1869_p1, %p2076_p5  ;;  %p1875_p2 = por %p1874_p9, %p1873_p11 }
  0x4f   : > { %470 = vmatpush.bf16.msra.mxu0 %v1557_v3  ;;  %951 = vmatpush.bf16.msra.mxu3 %v1582_v20  ;;  %v1561_v42 = vld [vmem:[#allocation9] sm:$0xff]  ;;  %v1587_v44 = vld [vmem:[#allocation9 + $0xd0] sm:$0xff]  ;;  %v1600_v45 = vld [vmem:[#allocation9 + $0x138] sm:$0xff] }
  0x50   : > { %v1569_v43 = vld [vmem:[#allocation9 + $0x40] sm:$0xff]  ;;  %v1586_v46 = vld [vmem:[#allocation9 + $0xc8] sm:$0xff]  ;;  %v1599_v47 = vld [vmem:[#allocation9 + $0x130] sm:$0xff]  ;;  %p1871_p8 = pneg %p1870_p4 }
  0x51   : > { %914 = vmatpush.bf16.msra.mxu1 %v1565_v26  ;;  %v1585_v48 = vld [vmem:[#allocation9 + $0xc0] sm:$0xff]  ;;  %v1714_v49 = vld [vmem:[%s2228_s2] ss:$0 sm:$0xff]  ;;  %v1598_v50 = vld [vmem:[#allocation9 + $0x128] sm:$0xff] }
  0x52   : > { %933 = vmatpush.bf16.msra.mxu2 %v1573_v27  ;;  %v1597_v54 = vld [vmem:[#allocation9 + $0x120] sm:$0xff]  ;;  %v1596_v58 = vld [vmem:[#allocation9 + $0x118] sm:$0xff]  ;;  %v1595_v62 = vld [vmem:[#allocation9 + $0x110] sm:$0xff]  ;;  %p1876_p10 = pnand %p1875_p2, %p1871_p8 }
  0x53   : > { %471 = vmatpush.bf16.msra.mxu0 %v1556_v4  ;;  %952 = vmatpush.bf16.msra.mxu3 %v1581_v21  ;;  %v1594_v3 = vld [vmem:[#allocation9 + $0x108] sm:$0xff]  ;;  %v1593_v7 = vld [vmem:[#allocation9 + $0x100] sm:$0xff]  ;;  %vm2147_vm6 = vmpackc.low %vm1941_vm5, %vm515_vm2 }
  0x54   : > { %vm2152_vm7 = vmpackc.low %vm1941_vm5, %vm531_vm3  ;;  %v1603_v56 = vld [vmem:[#allocation10 + $0x10] sm:$0xff] }
  0x55   : > { %915 = vmatpush.bf16.msra.mxu1 %v1564_v31 }
  0x56   : > { %934 = vmatpush.bf16.msra.mxu2 %v1572_v32 }
  0x57   : > { %472 = vmatpush.bf16.msra.mxu0 %v1555_v8  ;;  %953 = vmatpush.bf16.msra.mxu3 %v1580_v25  ;;  %v508_v8 = vadd.s32 8, %v507_v60 }
  0x59   : > { %916 = vmatpush.bf16.msra.mxu1 %v1563_v35  ;;  %v550_v23 = vadd.s32 1, %v508_v8 }
  0x5a   : > { %935 = vmatpush.bf16.msra.mxu2 %v1571_v36 }
  0x5b   : > { %473 = vmatpush.bf16.msra.mxu0 %v1554_v12  ;;  %954 = vmatpush.bf16.msra.mxu3 %v1579_v29  ;;  %vm554_vm8 = vcmp.lt.s32.totalorder %v550_v23, 16 }
  0x5c   : > { %vm2161_vm10 = vmpackc.low %vm554_vm8, %vm1941_vm5 }
  0x5d   : > { %917 = vmatpush.bf16.msra.mxu1 %v1562_v39 }
  0x5e   : > { %936 = vmatpush.bf16.msra.mxu2 %v1570_v40 }
  0x5f   : > { %474 = vmatpush.bf16.msra.mxu0 %v1553_v13  ;;  %955 = vmatpush.bf16.msra.mxu3 %v1578_v34 }
  0x61   : > { %918 = vmatpush.bf16.msra.mxu1 %v1561_v42  ;;  %v566_v42 = vadd.s32 2, %v508_v8 }
  0x62   : > { %475 = vmatmul.bf16.vlgmr.msra.gmra.mxu0 %v397_v16  ;;  %937 = vmatpush.bf16.msra.mxu2 %v1569_v43 }
  0x63   : > { %968 = vmatpush.bf16.msrb.mxu0 %v1592_v24  ;;  %956 = vmatpush.bf16.msra.mxu3 %v1577_v38  ;;  %vm570_vm11 = vcmp.lt.s32.totalorder %v566_v42, 16 }
  0x64   : > { %vm1504_vm12 = vmpackc.low %vm570_vm11, %vm1941_vm5 }
  0x65   : > { %987 = vmatpush.bf16.msrb.mxu1 %v1600_v45 }
  0x67   : > { %969 = vmatpush.bf16.msrb.mxu0 %v1591_v28  ;;  %1611 = vmatpush.bf16.msrb.mxu3 %v1592_v24 }
  0x69   : > { %988 = vmatpush.bf16.msrb.mxu1 %v1599_v47 }
  0x6b   : > { %970 = vmatpush.bf16.msrb.mxu0 %v1590_v33  ;;  %1612 = vmatpush.bf16.msrb.mxu3 %v1591_v28 }
  0x6d   : > { %989 = vmatpush.bf16.msrb.mxu1 %v1598_v50  ;;  %v1607_v50 = vld [vmem:[#allocation10 + $0x30] sm:$0xff] }
  0x6f   : > { %971 = vmatpush.bf16.msrb.mxu0 %v1589_v37  ;;  %1613 = vmatpush.bf16.msrb.mxu3 %v1590_v33 }
  0x71   : > { %990 = vmatpush.bf16.msrb.mxu1 %v1597_v54  ;;  %v1604_v54 = vld [vmem:[#allocation10 + $0x18] sm:$0xff] }
  0x72   : > { %480 = vmatmul.bf16.gmra.mxu0 %v398_v19 }
  0x73   : > { %972 = vmatpush.bf16.msrb.mxu0 %v1588_v41  ;;  %1614 = vmatpush.bf16.msrb.mxu3 %v1589_v37 }
  0x75   : > { %991 = vmatpush.bf16.msrb.mxu1 %v1596_v58  ;;  %v1602_v58 = vld [vmem:[#allocation10 + $0x8] sm:$0xff] }
  0x77   : > { %973 = vmatpush.bf16.msrb.mxu0 %v1587_v44  ;;  %1615 = vmatpush.bf16.msrb.mxu3 %v1588_v41 }
  0x79   : > { %992 = vmatpush.bf16.msrb.mxu1 %v1595_v62 }
  0x7b   : > { %974 = vmatpush.bf16.msrb.mxu0 %v1586_v46  ;;  %1616 = vmatpush.bf16.msrb.mxu3 %v1587_v44 }
  0x7d   : > { %993 = vmatpush.bf16.msrb.mxu1 %v1594_v3 }
  0x7f   : > { %975 = vmatpush.bf16.msrb.mxu0 %v1585_v48  ;;  %1617 = vmatpush.bf16.msrb.mxu3 %v1586_v46 }
  0x81   : > { %994 = vmatpush.bf16.msrb.mxu1 %v1593_v7 }
  0x83   : > { %1618 = vmatpush.bf16.msrb.mxu3 %v1585_v48 }
  0xdf   : > { %v476_v51 = vpop.f32.mrf.mxu0 }
  0xe0   : > { %v477_v53 = vadd.f32 %v1714_v49, %v476_v51  ;;  %v1606_v51 = vld [vmem:[#allocation10 + $0x28] sm:$0xff] }
  0xe2   : > { %vm487_vm0 = vcmp.gt.f32.partialorder %v477_v53, 0.0  ;;  %v492_v55 = vmul.f32 %v491_v52, %v477_v53 }
  0xe4   : > { %v496_v57 = vsel %vm487_vm0, %v477_v53, %v492_v55 }
  0xe5   : > { %502 = vst [vmem:[#allocation2 + $0x2] sm:$0xff] %v496_v57 }
  0xe7   : > { %v478_v59 = vpop.f32.mrf.mxu0 }
  0xe8   : > { %v479_v61 = vadd.f32 %v1714_v49, %v478_v59  ;;  %v1601_v59 = vld [vmem:[#allocation10] sm:$0xff] }
  0xea   : > { %vm488_vm1 = vcmp.gt.f32.partialorder %v479_v61, 0.0  ;;  %v493_v63 = vmul.f32 %v491_v52, %v479_v61 }
  0xec   : > { %v497_v1 = vsel %vm488_vm1, %v479_v61, %v493_v63  ;;  %v509_v11 = vld [vmem:[#allocation2] sm:$0xff] }
  0xed   : > { %503 = vst [vmem:[#allocation2 + $0xa] sm:$0xff] %v497_v1  ;;  %v579_v4 = vpack.c.bf16 %v497_v1, %v496_v57  ;;  %v525_v19 = vld [vmem:[#allocation2 + $0x1] sm:$0xff]  ;;  %v1715_v63 = vld [vmem:[%s2230_s4] ss:$0 sm:$0xff] }
  0xef   : > { %v481_v5 = vpop.f32.mrf.mxu0  ;;  %957 = vmatmul.bf16.vlgmr.msra.gmra.mxu3 %v579_v4 }
  0xf0   : > { %v482_v6 = vadd.f32 %v1714_v49, %v481_v5 }
  0xf2   : > { %vm489_vm4 = vcmp.gt.f32.partialorder %v482_v6, 0.0  ;;  %v494_v9 = vmul.f32 %v491_v52, %v482_v6 }
  0xf4   : > { %v498_v13 = vsel %vm489_vm4, %v482_v6, %v494_v9  ;;  %v510_v16 = vld [vmem:[#allocation2 + $0x8] sm:$0xff] }
  0xf5   : > { %v526_v20 = vld [vmem:[#allocation2 + $0x9] sm:$0xff]  ;;  %504 = vst [vmem:[#allocation2 + $0x12] sm:$0xff] %v498_v13  ;;  %v1487_v21 = vpack.c.bf16 %v510_v16, %v509_v11 }
  0xf6   : > { %v1493_v22 = vpack.c.bf16 %v526_v20, %v525_v19  ;;  %v545_v28 = vld [vmem:[#allocation2 + $0x3] sm:$0xff]  ;;  %v1011_v20 = vstv %s1510_s26 }
  0xf7   : > { %v483_v24 = vpop.f32.mrf.mxu0  ;;  %1488 = vmatmul.msk.bf16.vlgmr.msra.gmra.mxu1 %vm2147_vm6, %v1487_v21  ;;  %v561_v44 = vld [vmem:[#allocation2 + $0x4] sm:$0xff] }
  0xf8   : > { %1494 = vmatmul.msk.bf16.vlgmr.msra.gmra.mxu2 %vm2152_vm7, %v1493_v22  ;;  %v484_v25 = vadd.f32 %v1714_v49, %v483_v24  ;;  %v1608_v49 = vld [vmem:[#allocation10 + $0x38] sm:$0xff] }
  0xf9   : > { %1090 = vmatpush.bf16.msrb.mxu2 %v1608_v49  ;;  %v1716_v49 = vld [vmem:[%s2232_s6] ss:$0 sm:$0xff] }
  0xfa   : > { %vm490_vm9 = vcmp.gt.f32.partialorder %v484_v25, 0.0  ;;  %v495_v26 = vmul.f32 %v491_v52, %v484_v25  ;;  %v1605_v52 = vld [vmem:[#allocation10 + $0x20] sm:$0xff] }
  0xfc   : > { %v499_v27 = vsel %vm490_vm9, %v484_v25, %v495_v26  ;;  %v546_v29 = vld [vmem:[#allocation2 + $0xb] sm:$0xff] }
  0xfd   : > { %505 = vst [vmem:[#allocation2 + $0x1a] sm:$0xff] %v499_v27  ;;  %v1499_v31 = vpack.c.bf16 %v546_v29, %v545_v28  ;;  %v584_v32 = vpack.c.bf16 %v499_v27, %v498_v13  ;;  %v511_v33 = vld [vmem:[#allocation2 + $0x10] sm:$0xff]  ;;  %1091 = vmatpush.bf16.msrb.mxu2 %v1607_v50 }
  0xfe   : > { %v527_v35 = vld [vmem:[#allocation2 + $0x11] sm:$0xff] }
  0xff   : > { %1500 = vmatmul.msk.bf16.vlgmr.msrb.gmra.mxu0 %vm2161_vm10, %v1499_v31  ;;  %962 = vmatmul.bf16.gmra.mxu3 %v584_v32  ;;  %v562_v43 = vld [vmem:[#allocation2 + $0xc] sm:$0xff] }
 0x100   : > { %v1505_v45 = vpack.c.bf16 %v562_v43, %v561_v44 }
 0x101   : > { %1092 = vmatpush.bf16.msrb.mxu2 %v1606_v51  ;;  %v1114_v51 = vstv %s1543_s14 }
 0x104   : > { %v512_v34 = vld [vmem:[#allocation2 + $0x18] sm:$0xff] }
 0x105   : > { %v528_v36 = vld [vmem:[#allocation2 + $0x19] sm:$0xff]  ;;  %v1490_v37 = vpack.c.bf16 %v512_v34, %v511_v33  ;;  %1093 = vmatpush.bf16.msrb.mxu2 %v1605_v52 }
 0x106   : > { %v1496_v38 = vpack.c.bf16 %v528_v36, %v527_v35  ;;  %v547_v39 = vld [vmem:[#allocation2 + $0x13] sm:$0xff]  ;;  %v548_v40 = vld [vmem:[#allocation2 + $0x1b] sm:$0xff] }
 0x107   : > { %1491 = vmatmul.msk.bf16.gmra.mxu1 %vm2147_vm6, %v1490_v37  ;;  %v1502_v41 = vpack.c.bf16 %v548_v40, %v547_v39  ;;  %v563_v46 = vld [vmem:[#allocation2 + $0x14] sm:$0xff]  ;;  %v564_v47 = vld [vmem:[#allocation2 + $0x1c] sm:$0xff] }
 0x108   : > { %1497 = vmatmul.msk.bf16.gmra.mxu2 %vm2152_vm7, %v1496_v38  ;;  %v1508_v48 = vpack.c.bf16 %v564_v47, %v563_v46 }
 0x109   : > { %1094 = vmatpush.bf16.msrb.mxu2 %v1604_v54 }
 0x10d   : > { %1095 = vmatpush.bf16.msrb.mxu2 %v1603_v56 }
 0x10f   : > { %1503 = vmatmul.msk.bf16.vlgmr.msrb.gmra.mxu3 %vm2161_vm10, %v1502_v41 }
 0x111   : > { %1096 = vmatpush.bf16.msrb.mxu2 %v1602_v58 }
 0x115   : > { %1097 = vmatpush.bf16.msrb.mxu2 %v1601_v59 }
 0x117   : > { %1506 = vmatmul.msk.bf16.vlgmr.msrb.gmra.mxu1 %vm1504_vm12, %v1505_v45 }
 0x127   : > { %1509 = vmatmul.msk.bf16.gmra.mxu1 %vm1504_vm12, %v1508_v48 }
 0x172   : > { %v958_v55 = vpop.f32.mrf.mxu3 }
 0x174   : > { %v920_v53 = vpop.f32.mrf.mxu1 }
 0x175   : > { %v921_v2 = vadd.f32 %v1715_v63, %v920_v53 }
 0x17a   : > { %v960_v60 = vpop.f32.mrf.mxu3 }
 0x17b   : > { %v939_v61 = vpop.f32.mrf.mxu2 }
 0x17c   : > { %v922_v57 = vpop.f32.mrf.mxu1  ;;  %v940_v4 = vadd.f32 %v939_v61, %v921_v2  ;;  %v977_v5 = vpop.f32.mrf.mxu0 }
 0x17d   : > { %v923_v6 = vadd.f32 %v1715_v63, %v922_v57 }
 0x17e   : > { %v959_v7 = vadd.f32 %v958_v55, %v940_v4  ;;  %v1132_v55 = vstv %s1544_s23 }
 0x180   : > { %v978_v11 = vadd.f32 %v977_v5, %v959_v7 }
 0x182   : > { %v963_v0 = vpop.f32.mrf.mxu3 }
 0x183   : > { %v941_v3 = vpop.f32.mrf.mxu2 }
 0x184   : > { %v925_v62 = vpop.f32.mrf.mxu1  ;;  %v942_v8 = vadd.f32 %v941_v3, %v923_v6  ;;  %v979_v19 = vpop.f32.mrf.mxu0 }
 0x185   : > { %v926_v26 = vadd.f32 %v1715_v63, %v925_v62 }
 0x186   : > { %v961_v12 = vadd.f32 %v960_v60, %v942_v8 }
 0x188   : > { %v980_v21 = vadd.f32 %v979_v19, %v961_v12 }
 0x18a   : > { %v965_v9 = vpop.f32.mrf.mxu3 }
 0x18b   : > { %v944_v13 = vpop.f32.mrf.mxu2 }
 0x18c   : > { %v927_v1 = vpop.f32.mrf.mxu1  ;;  %v945_v28 = vadd.f32 %v944_v13, %v926_v26 }
 0x18d   : > { %v928_v33 = vadd.f32 %v1715_v63, %v927_v1 }
 0x18e   : > { %v964_v35 = vadd.f32 %v963_v0, %v945_v28 }
 0x192   : > { %v982_v25 = vpop.f32.mrf.mxu3 }
 0x193   : > { %v946_v31 = vpop.f32.mrf.mxu2  ;;  %v983_v37 = vadd.f32 %v982_v25, %v964_v35 }
 0x194   : > { %v996_v10 = vpop.f32.mrf.mxu1  ;;  %v947_v36 = vadd.f32 %v946_v31, %v928_v33 }
 0x195   : > { %v997_v16 = vadd.f32 %v996_v10, %v978_v11 }
 0x196   : > { %v966_v39 = vadd.f32 %v965_v9, %v947_v36 }
 0x197   : > { %v1012_v23 = vmul.f32 %v1011_v20, %v997_v16  ;;  %vm1007_vm13 = vcmp.gt.f32.partialorder %v997_v16, 0.0 }
 0x199   : > { %v1016_v29 = vsel %vm1007_vm13, %v997_v16, %v1012_v23 }
 0x19a   : > { %v984_v38 = vpop.f32.mrf.mxu3 }
 0x19b   : > { %v985_v41 = vadd.f32 %v984_v38, %v966_v39 }
 0x19c   : > { %v998_v22 = vpop.f32.mrf.mxu1 }
 0x19d   : > { %v999_v24 = vadd.f32 %v998_v22, %v980_v21 }
 0x19f   : > { %vm1008_vm14 = vcmp.gt.f32.partialorder %v999_v24, 0.0  ;;  %v1013_v27 = vmul.f32 %v1011_v20, %v999_v24 }
 0x1a1   : > { %v1017_v30 = vsel %vm1008_vm14, %v999_v24, %v1013_v27 }
 0x1a2   : > { %v1020_v32 = vpack.c.bf16 %v1017_v30, %v1016_v29 }
 0x1a4   : > { %v1001_v34 = vpop.f32.mrf.mxu1  ;;  %1098 = vmatmul.bf16.vlgmr.msrb.gmra.mxu2 %v1020_v32 }
 0x1a5   : > { %v1002_v40 = vadd.f32 %v1001_v34, %v983_v37 }
 0x1a7   : > { %v1014_v43 = vmul.f32 %v1011_v20, %v1002_v40  ;;  %vm1009_vm15 = vcmp.gt.f32.partialorder %v1002_v40, 0.0 }
 0x1a9   : > { %v1018_v46 = vsel %vm1009_vm15, %v1002_v40, %v1014_v43 }
 0x1ac   : > { %v1003_v42 = vpop.f32.mrf.mxu1 }
 0x1ad   : > { %v1004_v44 = vadd.f32 %v1003_v42, %v985_v41 }
 0x1af   : > { %v1015_v45 = vmul.f32 %v1011_v20, %v1004_v44  ;;  %vm1010_vm0 = vcmp.gt.f32.partialorder %v1004_v44, 0.0 }
 0x1b1   : > { %v1019_v47 = vsel %vm1010_vm0, %v1004_v44, %v1015_v45 }
 0x1b2   : > { %v1021_v48 = vpack.c.bf16 %v1019_v47, %v1018_v46 }
 0x1b4   : > { %1103 = vmatmul.bf16.gmra.mxu2 %v1021_v48 }
 0x227   : > { %v1099_v50 = vpop.f32.mrf.mxu2 }
 0x228   : > { %v1100_v52 = vadd.f32 %v1716_v49, %v1099_v50 }
 0x22a   : > { %vm1110_vm1 = vcmp.gt.f32.partialorder %v1100_v52, 0.0  ;;  %v1115_v53 = vmul.f32 %v1114_v51, %v1100_v52 }
 0x22c   : > { %v1119_v54 = vsel %vm1110_vm1, %v1100_v52, %v1115_v53 }
 0x22d   : > { %v1123_v56 = vadd.f32 %v1119_v54, %v2128_v14 }
 0x22f   : > { %vm1128_vm2 = vcmp.gt.f32.partialorder %v1123_v56, 0.0  ;;  %v1133_v57 = vmul.f32 %v1132_v55, %v1123_v56  ;;  %v1101_v58 = vpop.f32.mrf.mxu2 }
 0x230   : > { %v1102_v59 = vadd.f32 %v1716_v49, %v1101_v58 }
 0x231   : > { %v1137_v60 = vsel %vm1128_vm2, %v1123_v56, %v1133_v57 }
 0x232   : > { %1141 = vst [vmem:[%s2183_s18] sm:$0xff] %v1137_v60  ;;  %vm1111_vm3 = vcmp.gt.f32.partialorder %v1102_v59, 0.0  ;;  %v1116_v61 = vmul.f32 %v1114_v51, %v1102_v59 }
 0x234   : > { %v1120_v62 = vsel %vm1111_vm3, %v1102_v59, %v1116_v61 }
 0x235   : > { %v1124_v63 = vadd.f32 %v1120_v62, %v2131_v15 }
 0x237   : > { %vm1129_vm4 = vcmp.gt.f32.partialorder %v1124_v63, 0.0  ;;  %v1134_v0 = vmul.f32 %v1132_v55, %v1124_v63  ;;  %v1104_v14 = vpop.f32.mrf.mxu2 }
 0x238   : > { %v1105_v1 = vadd.f32 %v1716_v49, %v1104_v14 }
 0x239   : > { %v1138_v2 = vsel %vm1129_vm4, %v1124_v63, %v1134_v0 }
 0x23a   : > { %1142 = vst [vmem:[%s2183_s18 + $0x8] sm:$0xff] %v1138_v2  ;;  %vm1112_vm5 = vcmp.gt.f32.partialorder %v1105_v1, 0.0  ;;  %v1117_v3 = vmul.f32 %v1114_v51, %v1105_v1 }
 0x23c   : > { %v1121_v4 = vsel %vm1112_vm5, %v1105_v1, %v1117_v3 }
 0x23d   : > { %v1125_v5 = vadd.f32 %v1121_v4, %v2136_v17 }
 0x23f   : > { %vm1130_vm6 = vcmp.gt.f32.partialorder %v1125_v5, 0.0  ;;  %v1135_v6 = vmul.f32 %v1132_v55, %v1125_v5  ;;  %v1106_v7 = vpop.f32.mrf.mxu2 }
 0x240   : > { %v1107_v8 = vadd.f32 %v1716_v49, %v1106_v7 }
 0x241   : > { %v1139_v15 = vsel %vm1130_vm6, %v1125_v5, %v1135_v6 }
 0x242   : > { %1143 = vst [vmem:[%s2183_s18 + $0x10] sm:$0xff] %v1139_v15  ;;  %vm1113_vm7 = vcmp.gt.f32.partialorder %v1107_v8, 0.0  ;;  %v1118_v9 = vmul.f32 %v1114_v51, %v1107_v8 }
 0x244   : > { %v1122_v10 = vsel %vm1113_vm7, %v1107_v8, %v1118_v9 }
 0x245   : > { %v1126_v17 = vadd.f32 %v1122_v10, %v2139_v18 }
 0x247   : > { %vm1131_vm8 = vcmp.gt.f32.partialorder %v1126_v17, 0.0  ;;  %v1136_v11 = vmul.f32 %v1132_v55, %v1126_v17 }
 0x249   : > { %v1140_v12 = vsel %vm1131_vm8, %v1126_v17, %v1136_v11 }
 0x24a   : > { %1144 = vst [vmem:[%s2183_s18 + $0x18] sm:$0xff] %v1140_v12 }
 0x24b   : > { %1879 = shalt.err (!%p1876_p10)
}
 0x24c   : > { %s1942_s24 = smov 128   ;;  %s1943_s18 = smov 8  }
 0x24d   : > { %1637 = dma.vmem_to_hbm [thread:$0]  (%p2076_p5), %s1160_s16, 512, %s1162_s21, %s1146_s9, %s1942_s24, %s1942_s24, %s1943_s18  }
 0x24e PF: > { %s1176_s1 = sand.u32 1, %s1918_s27   ;;  %p2251_p12 = scmp.ge.s32.totalorder %s1930_s30, 2 }
 0x24f   : > { %s1177_s3 = scalar_lea.sflag [#allocation5], %s1176_s1 }
 0x250   : > { %p1657_p13 = pnand %p2251_p12, %p2024_p6 }
 0x252   : > { %p1658_p0 = pneg %p1657_p13 }
 0x254   : > { %1913 = dma.done.wait (%p1658_p0), %s1177_s3, 512  }
 0x255   : > { %1915 = vsyncadd (%p1658_p0), %s1177_s3, 4294966784  ;;  %p24_p3 = scmp.ge.s32.totalorder %s2063_s10, 4   ;;  %s2252_s27 = smov %s1922_s28 }
 0x256   : > { %s2253_s28 = smov %s1926_s29  ;;  %s2254_s29 = smov %s2072_s13 }
 0x257   : > { %s2255_s30 = smov %s2063_s10  ;;  %26 = sbr.rel (!%p24_p3) target bundleno = 11 (0xb), region = 114 }
 0x25c   :  { %1183 = vsyncpa [#allocation4], 1 }
 0x25d   :  { %1185 = vsyncpa [#allocation4 + $0x1], 1 }
 0x25e   :  { %1186 = vsyncpa [#allocation8], 1 }
 0x25f   :  { %1187 = vsyncpa [#allocation11], 1 }
 0x260   :  { %1188 = vsyncpa [#allocation5], 1 }
 0x261   :  { %1190 = vsyncpa [#allocation5 + $0x1], 1 }
 0x262   :  { %1191 = vsyncpa [#allocation6], 1 }
 0x263   :  { %1193 = vsyncpa [#allocation6 + $0x1], 1 }

</bundles_post_ra>
